<compile_context>
chip_gen: v6e
topology: v6e:2x2x1
jax: 0.10.0
libtpu: 0.0.40
codegen_flags: <defaults>
</compile_context>

<pallas_src>
import functools
import math

import jax
import jax.numpy as jnp
from jax.experimental import pallas as pl
from jax.experimental.pallas import tpu as pltpu


def _layer_norm(x, w, b, eps=1e-5):
    # fp16-safe LayerNorm: caller promotes x to f32 first.
    mu = jnp.mean(x, axis=-1, keepdims=True)
    var = jnp.mean(jnp.square(x - mu), axis=-1, keepdims=True)
    return (x - mu) * jax.lax.rsqrt(var + eps) * w + b


def _split_heads(t, n_head, dh):
    # (rows, D) -> (H, rows, dh): static lane slices stacked along a new leading
    # (batch) axis so all following contractions are head-batched dot_generals.
    return jnp.stack([t[:, h * dh:(h + 1) * dh] for h in range(n_head)], axis=0)


def residual_attention_kernel(
    x_ref,                 # (1, L, D) full sequence for batch n
    ln1_w, ln1_b,          # (1, D) f32
    wq_t, bq,              # (D, D) bf16 (1/sqrt(dh) pre-folded), (1, D) f32
    wkv_t, bkv,            # (D, 2D) bf16, (1, 2D) f32
    wo_h, bo,              # (H, dh, D) bf16 (Wo reshaped per head), (1, D) f32
    ln2_w, ln2_b,          # (1, D) f32
    wfc_t, bfc,            # (D, 4D) bf16, (1, 4D) f32
    wproj_t, bproj,        # (4D, D) bf16, (1, D) f32
    out_ref,               # (1, Tq, D)
    attnw_ref,             # (1, Tq, Lp)  lane-padded, head-averaged weights
    *, n_head, block_q, lane_pad,
):
    # TODO(synk): optional additive attn_mask not implemented (CLIP visual
    # blocks use attn_mask=None, which is what this kernel covers).
    L, D = x_ref.shape[1], x_ref.shape[2]
    dh = D // n_head
    Tq = block_q

    # ---- load input; element-wise math stays in f32 (fp16-safe LN) ----------
    x_full = x_ref[0].astype(jnp.float32)                        # (L, D)
    h_full = _layer_norm(x_full, ln1_w[...], ln1_b[...])         # (L, D)
    if Tq == L:                                                  # single Q tile
        x_tile = x_full
        h_tile = h_full
    else:                                                        # Q-tiled grid
        q_start = pl.multiple_of(pl.program_id(1) * Tq, Tq)
        x_tile = x_ref[0, pl.ds(q_start, Tq), :].astype(jnp.float32)
        h_tile = jax.lax.dynamic_slice_in_dim(h_full, q_start, Tq, axis=0)

    # ---- projections: bf16 operands on the MXU, f32 accumulation ------------
    q = jnp.dot(h_tile.astype(jnp.bfloat16), wq_t[...],
                preferred_element_type=jnp.float32) + bq[...]    # (Tq, D), scaled
    kv = jnp.dot(h_full.astype(jnp.bfloat16), wkv_t[...],
                 preferred_element_type=jnp.float32) + bkv[...]  # (L, 2D)
    k = kv[:, :D]
    v = kv[:, D:]

    qh = _split_heads(q, n_head, dh).astype(jnp.bfloat16)        # (H, Tq, dh)
    kh = _split_heads(k, n_head, dh).astype(jnp.bfloat16)        # (H, L, dh)
    vh = _split_heads(v, n_head, dh).astype(jnp.bfloat16)        # (H, L, dh)

    # ---- head-batched attention (scale already folded into wq_t/bq) ---------
    s = jnp.einsum('hqd,hkd->hqk', qh, kh,
                   preferred_element_type=jnp.float32)           # (H, Tq, L)
    s = s - jnp.max(s, axis=-1, keepdims=True)
    p = jnp.exp(s)
    p = p * pl.reciprocal(jnp.sum(p, axis=-1, keepdims=True), approx=True)

    o = jnp.einsum('hqk,hkd->hqd', p.astype(jnp.bfloat16), vh,
                   preferred_element_type=jnp.float32)           # (H, Tq, dh)

    # ---- output projection: head-concat folded into Wo (sum over heads) -----
    attn_out = jnp.einsum('hqd,hde->hqe', o.astype(jnp.bfloat16), wo_h[...],
                          preferred_element_type=jnp.float32)    # (H, Tq, D)
    attn_out = jnp.sum(attn_out, axis=0) + bo[...]               # (Tq, D)

    # ---- first residual, ln_2, MLP (QuickGELU), second residual -------------
    x1 = x_tile + attn_out
    h2 = _layer_norm(x1, ln2_w[...], ln2_b[...])
    fc = jnp.dot(h2.astype(jnp.bfloat16), wfc_t[...],
                 preferred_element_type=jnp.float32) + bfc[...]  # (Tq, 4D)
    fc = fc * jax.nn.sigmoid(1.702 * fc)                         # QuickGELU
    mlp = jnp.dot(fc.astype(jnp.bfloat16), wproj_t[...],
                  preferred_element_type=jnp.float32) + bproj[...]
    y = x1 + mlp

    out_ref[0] = y.astype(out_ref.dtype)

    # ---- head-averaged attention weights, lane-padded for dense stores ------
    w_avg = jnp.mean(p, axis=0)                                  # (Tq, L)
    if lane_pad > L:
        w_avg = jnp.concatenate(
            [w_avg, jnp.zeros((Tq, lane_pad - L), jnp.float32)], axis=-1)
    attnw_ref[0] = w_avg.astype(attnw_ref.dtype)


def _choose_block_q(L, n_batch):
    # MXU-friendly Q-row tiles; tile only when it divides evenly.
    if L <= 128:
        return L
    if L % 256 == 0 and (L // 256) * n_batch >= 2:
        return 256
    if L % 128 == 0:
        return 128
    # TODO(synk): pad ragged L (e.g. CLIP's 50/257) so it can be Q-tiled across
    # both v7x TensorCores; a single Q tile per batch item is used instead.
    return L


def _build_pallas_fn(N, L, D, n_head, out_dtype, block_q, lane_pad,
                     weight_shapes):
    num_q_tiles = L // block_q

    def weight_spec(shape):
        ndim = len(shape)
        return pl.BlockSpec(shape, lambda n, qi, _nd=ndim: (0,) * _nd)

    in_specs = ([pl.BlockSpec((1, L, D), lambda n, qi: (n, 0, 0))] +
                [weight_spec(s) for s in weight_shapes])
    out_specs = (pl.BlockSpec((1, block_q, D), lambda n, qi: (n, qi, 0)),
                 pl.BlockSpec((1, block_q, lane_pad), lambda n, qi: (n, qi, 0)))
    out_shape = (jax.ShapeDtypeStruct((N, L, D), out_dtype),
                 jax.ShapeDtypeStruct((N, L, lane_pad), jnp.float32))

    kernel = functools.partial(residual_attention_kernel, n_head=n_head,
                               block_q=block_q, lane_pad=lane_pad)
    return pl.pallas_call(
        kernel,
        out_shape=out_shape,
        grid=(N, num_q_tiles),
        in_specs=in_specs,
        out_specs=out_specs,
        compiler_params=pltpu.CompilerParams(
            dimension_semantics=("parallel", "parallel"),
            vmem_limit_bytes=48 * 1024 * 1024,
        ),
    )


@functools.partial(jax.jit, static_argnames=('n_head',))
def residual_attention_block(x_lnd, params, n_head):
    """x_lnd: (L, N, D) seq-first. Returns ((L, N, D), attn_weights (N, L, L))."""
    L, N, D = x_lnd.shape
    assert D % n_head == 0, "d_model must be divisible by n_head"
    dh = D // n_head
    scale = 1.0 / math.sqrt(dh)

    x = jnp.transpose(x_lnd, (1, 0, 2))                      # (N, L, D)

    wdt = jnp.bfloat16   # MXU operand dtype (f32 accumulate)

    w_in = params['in_proj_weight']                          # (3D, D)
    b_in = params['in_proj_bias']                            # (3D,)
    # Fold 1/sqrt(dh) into the Q projection (one-time, host-side).
    wq_t = (w_in[:D].T * scale).astype(wdt)                  # (D, D)
    bq = (b_in[:D] * scale)[None, :].astype(jnp.float32)     # (1, D)
    wkv_t = w_in[D:].T.astype(wdt)                           # (D, 2D)
    bkv = b_in[D:][None, :].astype(jnp.float32)              # (1, 2D)
    # Output projection reshaped per head so the head-concat folds into it.
    wo_h = params['out_proj_weight'].T.reshape(n_head, dh, D).astype(wdt)
    bo = params['out_proj_bias'][None, :].astype(jnp.float32)
    ln1_w = params['ln1_weight'][None, :].astype(jnp.float32)
    ln1_b = params['ln1_bias'][None, :].astype(jnp.float32)
    ln2_w = params['ln2_weight'][None, :].astype(jnp.float32)
    ln2_b = params['ln2_bias'][None, :].astype(jnp.float32)
    wfc_t = params['c_fc_weight'].T.astype(wdt)              # (D, 4D)
    bfc = params['c_fc_bias'][None, :].astype(jnp.float32)
    wproj_t = params['c_proj_weight'].T.astype(wdt)          # (4D, D)
    bproj = params['c_proj_bias'][None, :].astype(jnp.float32)

    weights = [ln1_w, ln1_b, wq_t, bq, wkv_t, bkv, wo_h, bo,
               ln2_w, ln2_b, wfc_t, bfc, wproj_t, bproj]
    weight_shapes = [w.shape for w in weights]

    block_q = _choose_block_q(L, N)
    lane_pad = max(128, ((L + 127) // 128) * 128)            # lane-dense stores

    fn = _build_pallas_fn(N, L, D, n_head, x.dtype, block_q, lane_pad,
                          weight_shapes)
    y, w_pad = fn(x, *weights)

    w = w_pad[:, :, :L]                                      # drop lane padding
    return jnp.transpose(y, (1, 0, 2)), w                    # back to (L, N, D)


def _reference(x_lnd, params, n_head):
    """Pure-JAX f32 reference mirroring torch.nn.MultiheadAttention semantics."""
    L, N, D = x_lnd.shape
    x = x_lnd.astype(jnp.float32)
    dh = D // n_head

    def ln(t, w, b):
        mu = t.mean(-1, keepdims=True)
        var = ((t - mu) ** 2).mean(-1, keepdims=True)
        return (t - mu) / jnp.sqrt(var + 1e-5) * w + b

    h = ln(x, params['ln1_weight'], params['ln1_bias'])
    qkv = h @ params['in_proj_weight'].T + params['in_proj_bias']
    q, k, v = jnp.split(qkv, 3, axis=-1)

    def heads(t):
        return jnp.transpose(t.reshape(L, N * n_head, dh), (1, 0, 2))

    qh = heads(q) / math.sqrt(dh)
    kh = heads(k)
    vh = heads(v)
    s = jnp.einsum('bld,bmd->blm', qh, kh)
    p = jax.nn.softmax(s, axis=-1)
    o = jnp.einsum('blm,bmd->bld', p, vh)
    o = jnp.transpose(o, (1, 0, 2)).reshape(L, N, D)
    o = o @ params['out_proj_weight'].T + params['out_proj_bias']
    x1 = x + o
    h2 = ln(x1, params['ln2_weight'], params['ln2_bias'])
    fc = h2 @ params['c_fc_weight'].T + params['c_fc_bias']
    fc = fc * jax.nn.sigmoid(1.702 * fc)
    y = x1 + fc @ params['c_proj_weight'].T + params['c_proj_bias']
    w_avg = p.reshape(N, n_head, L, L).mean(axis=1)
    return y, w_avg


def init_params(key, d_model):
    ks = jax.random.split(key, 6)
    s = 0.02
    return {
        'ln1_weight': jnp.ones((d_model,), jnp.float32),
        'ln1_bias': jnp.zeros((d_model,), jnp.float32),
        'in_proj_weight': s * jax.random.normal(ks[0], (3 * d_model, d_model), jnp.float32),
        'in_proj_bias': jnp.zeros((3 * d_model,), jnp.float32),
        'out_proj_weight': s * jax.random.normal(ks[1], (d_model, d_model), jnp.float32),
        'out_proj_bias': jnp.zeros((d_model,), jnp.float32),
        'ln2_weight': jnp.ones((d_model,), jnp.float32),
        'ln2_bias': jnp.zeros((d_model,), jnp.float32),
        'c_fc_weight': s * jax.random.normal(ks[2], (4 * d_model, d_model), jnp.float32),
        'c_fc_bias': jnp.zeros((4 * d_model,), jnp.float32),
        'c_proj_weight': s * jax.random.normal(ks[3], (d_model, 4 * d_model), jnp.float32),
        'c_proj_bias': jnp.zeros((d_model,), jnp.float32),
    }


if __name__ == "__main__":
    key = jax.random.PRNGKey(0)
    k1, k2, k3, k4 = jax.random.split(key, 4)

    # Case 1: tiny CLIP-like block (seq-first input), single Q tile, lane-padded
    # attention-weights output.  L=8, N=2, d_model=32, heads=4 (dh=8).
    L, N, D, H = 8, 2, 32, 4
    x = jax.random.normal(k1, (L, N, D), jnp.float32)
    params = init_params(k2, D)
    y, w = residual_attention_block(x, params, H)
    y, w = jax.block_until_ready((y, w))
    y_ref, w_ref = _reference(x, params, H)
    assert y.shape == (L, N, D) and w.shape == (N, L, L)
    assert jnp.allclose(y, y_ref, rtol=1e-2, atol=1e-2), \
        f"y mismatch: {float(jnp.max(jnp.abs(y - y_ref)))}"
    assert jnp.allclose(w, w_ref, rtol=1e-2, atol=1e-3), \
        f"w mismatch: {float(jnp.max(jnp.abs(w - w_ref)))}"

    # Case 2: longer sequence exercising the Q-tiled (multi-tile) grid path.
    L2, N2, D2, H2 = 384, 1, 64, 2
    x2 = jax.random.normal(k3, (L2, N2, D2), jnp.float32)
    params2 = init_params(k4, D2)
    y2, w2 = residual_attention_block(x2, params2, H2)
    y2, w2 = jax.block_until_ready((y2, w2))
    y2_ref, w2_ref = _reference(x2, params2, H2)
    assert y2.shape == (L2, N2, D2) and w2.shape == (N2, L2, L2)
    assert jnp.allclose(y2, y2_ref, rtol=1e-2, atol=1e-2), \
        f"y2 mismatch: {float(jnp.max(jnp.abs(y2 - y2_ref)))}"
    assert jnp.allclose(w2, w2_ref, rtol=1e-2, atol=1e-3), \
        f"w2 mismatch: {float(jnp.max(jnp.abs(w2 - w2_ref)))}"

    print("KERNEL_OK")
</pallas_src>

<mosaic_0001>
module attributes {stable_mosaic.version = 11 : i64} {
  func.func @residual_attention_kernel(%arg0: i32, %arg1: i32, %arg2: memref<1x8x32xf32, #tpu.memory_space<vmem>>, %arg3: memref<1x32xf32, #tpu.memory_space<vmem>>, %arg4: memref<1x32xf32, #tpu.memory_space<vmem>>, %arg5: memref<32x32xbf16, #tpu.memory_space<vmem>>, %arg6: memref<1x32xf32, #tpu.memory_space<vmem>>, %arg7: memref<32x64xbf16, #tpu.memory_space<vmem>>, %arg8: memref<1x64xf32, #tpu.memory_space<vmem>>, %arg9: memref<4x8x32xbf16, #tpu.memory_space<vmem>>, %arg10: memref<1x32xf32, #tpu.memory_space<vmem>>, %arg11: memref<1x32xf32, #tpu.memory_space<vmem>>, %arg12: memref<1x32xf32, #tpu.memory_space<vmem>>, %arg13: memref<32x128xbf16, #tpu.memory_space<vmem>>, %arg14: memref<1x128xf32, #tpu.memory_space<vmem>>, %arg15: memref<128x32xbf16, #tpu.memory_space<vmem>>, %arg16: memref<1x32xf32, #tpu.memory_space<vmem>>, %arg17: memref<1x8x32xf32, #tpu.memory_space<vmem>>, %arg18: memref<1x8x128xf32, #tpu.memory_space<vmem>>) attributes {dimension_semantics = [#tpu.dimension_semantics<parallel>, #tpu.dimension_semantics<parallel>], iteration_bounds = array<i64: 2, 1>, scalar_prefetch = 0 : i64, scratch_operands = 0 : i64, tpu.core_type = #tpu.core_type<tc>, window_params = [{transform_indices = @transform_0, window_bounds = array<i64: 1, 8, 32>}, {pipeline_mode = #tpu.pipeline_mode<synchronous>, transform_indices = @transform_1, window_bounds = array<i64: 1, 32>}, {pipeline_mode = #tpu.pipeline_mode<synchronous>, transform_indices = @transform_2, window_bounds = array<i64: 1, 32>}, {pipeline_mode = #tpu.pipeline_mode<synchronous>, transform_indices = @transform_3, window_bounds = array<i64: 32, 32>}, {pipeline_mode = #tpu.pipeline_mode<synchronous>, transform_indices = @transform_4, window_bounds = array<i64: 1, 32>}, {pipeline_mode = #tpu.pipeline_mode<synchronous>, transform_indices = @transform_5, window_bounds = array<i64: 32, 64>}, {pipeline_mode = #tpu.pipeline_mode<synchronous>, transform_indices = @transform_6, window_bounds = array<i64: 1, 64>}, {pipeline_mode = #tpu.pipeline_mode<synchronous>, transform_indices = @transform_7, window_bounds = array<i64: 4, 8, 32>}, {pipeline_mode = #tpu.pipeline_mode<synchronous>, transform_indices = @transform_8, window_bounds = array<i64: 1, 32>}, {pipeline_mode = #tpu.pipeline_mode<synchronous>, transform_indices = @transform_9, window_bounds = array<i64: 1, 32>}, {pipeline_mode = #tpu.pipeline_mode<synchronous>, transform_indices = @transform_10, window_bounds = array<i64: 1, 32>}, {pipeline_mode = #tpu.pipeline_mode<synchronous>, transform_indices = @transform_11, window_bounds = array<i64: 32, 128>}, {pipeline_mode = #tpu.pipeline_mode<synchronous>, transform_indices = @transform_12, window_bounds = array<i64: 1, 128>}, {pipeline_mode = #tpu.pipeline_mode<synchronous>, transform_indices = @transform_13, window_bounds = array<i64: 128, 32>}, {pipeline_mode = #tpu.pipeline_mode<synchronous>, transform_indices = @transform_14, window_bounds = array<i64: 1, 32>}, {transform_indices = @transform_15, window_bounds = array<i64: 1, 8, 32>}, {transform_indices = @transform_16, window_bounds = array<i64: 1, 8, 128>}]} {
    %c0 = arith.constant 0 : index
    %c0_0 = arith.constant 0 : index
    %c0_1 = arith.constant 0 : index
    %0 = vector.load %arg2[%c0, %c0_0, %c0_1] : memref<1x8x32xf32, #tpu.memory_space<vmem>>, vector<1x8x32xf32>
    %1 = vector.shape_cast %0 : vector<1x8x32xf32> to vector<8x32xf32>
    %c0_2 = arith.constant 0 : index
    %c0_3 = arith.constant 0 : index
    %2 = vector.load %arg3[%c0_2, %c0_3] : memref<1x32xf32, #tpu.memory_space<vmem>>, vector<1x32xf32>
    %c0_4 = arith.constant 0 : index
    %c0_5 = arith.constant 0 : index
    %3 = vector.load %arg4[%c0_4, %c0_5] : memref<1x32xf32, #tpu.memory_space<vmem>>, vector<1x32xf32>
    %cst = arith.constant dense<0.000000e+00> : vector<8xf32>
    %4 = vector.multi_reduction <add>, %1, %cst [1] : vector<8x32xf32> to vector<8xf32>
    %5 = vector.shape_cast %4 : vector<8xf32> to vector<8x1xf32>
    %cst_6 = arith.constant 3.200000e+01 : f32
    %6 = vector.broadcast %cst_6 : f32 to vector<8x1xf32>
    %7 = arith.divf %5, %6 : vector<8x1xf32>
    %8 = vector.broadcast %7 : vector<8x1xf32> to vector<8x32xf32>
    %9 = arith.subf %1, %8 : vector<8x32xf32>
    %10 = arith.mulf %9, %9 : vector<8x32xf32>
    %cst_7 = arith.constant dense<0.000000e+00> : vector<8xf32>
    %11 = vector.multi_reduction <add>, %10, %cst_7 [1] : vector<8x32xf32> to vector<8xf32>
    %12 = vector.shape_cast %11 : vector<8xf32> to vector<8x1xf32>
    %cst_8 = arith.constant 3.200000e+01 : f32
    %13 = vector.broadcast %cst_8 : f32 to vector<8x1xf32>
    %14 = arith.divf %12, %13 : vector<8x1xf32>
    %15 = vector.broadcast %7 : vector<8x1xf32> to vector<8x32xf32>
    %16 = arith.subf %1, %15 : vector<8x32xf32>
    %cst_9 = arith.constant 9.99999974E-6 : f32
    %17 = vector.broadcast %cst_9 : f32 to vector<8x1xf32>
    %18 = arith.addf %14, %17 : vector<8x1xf32>
    %19 = math.rsqrt %18 : vector<8x1xf32>
    %20 = vector.broadcast %19 : vector<8x1xf32> to vector<8x32xf32>
    %21 = arith.mulf %16, %20 : vector<8x32xf32>
    %22 = vector.broadcast %2 : vector<1x32xf32> to vector<8x32xf32>
    %23 = arith.mulf %21, %22 : vector<8x32xf32>
    %24 = vector.broadcast %3 : vector<1x32xf32> to vector<8x32xf32>
    %25 = arith.addf %23, %24 : vector<8x32xf32>
    %26 = arith.truncf %25 : vector<8x32xf32> to vector<8x32xbf16>
    %c0_10 = arith.constant 0 : index
    %c0_11 = arith.constant 0 : index
    %27 = vector.load %arg5[%c0_10, %c0_11] : memref<32x32xbf16, #tpu.memory_space<vmem>>, vector<32x32xbf16>
    %cst_12 = arith.constant dense<0.000000e+00> : vector<8x32xf32>
    %28 = tpu.matmul %26, %27, %cst_12 {dimension_numbers = #tpu.dot_dimension_numbers<[1], [0], [0], [1], [0, 0, 1, 1], [], []>} : vector<8x32xbf16>, vector<32x32xbf16>, vector<8x32xf32> -> vector<8x32xf32>
    %c0_13 = arith.constant 0 : index
    %c0_14 = arith.constant 0 : index
    %29 = vector.load %arg6[%c0_13, %c0_14] : memref<1x32xf32, #tpu.memory_space<vmem>>, vector<1x32xf32>
    %30 = vector.broadcast %29 : vector<1x32xf32> to vector<8x32xf32>
    %31 = arith.addf %28, %30 : vector<8x32xf32>
    %32 = arith.truncf %25 : vector<8x32xf32> to vector<8x32xbf16>
    %c0_15 = arith.constant 0 : index
    %c0_16 = arith.constant 0 : index
    %33 = vector.load %arg7[%c0_15, %c0_16] : memref<32x64xbf16, #tpu.memory_space<vmem>>, vector<32x64xbf16>
    %cst_17 = arith.constant dense<0.000000e+00> : vector<8x64xf32>
    %34 = tpu.matmul %32, %33, %cst_17 {dimension_numbers = #tpu.dot_dimension_numbers<[1], [0], [0], [1], [0, 0, 1, 1], [], []>} : vector<8x32xbf16>, vector<32x64xbf16>, vector<8x64xf32> -> vector<8x64xf32>
    %c0_18 = arith.constant 0 : index
    %c0_19 = arith.constant 0 : index
    %35 = vector.load %arg8[%c0_18, %c0_19] : memref<1x64xf32, #tpu.memory_space<vmem>>, vector<1x64xf32>
    %36 = vector.broadcast %35 : vector<1x64xf32> to vector<8x64xf32>
    %37 = arith.addf %34, %36 : vector<8x64xf32>
    %38 = vector.extract_strided_slice %37 {offsets = [0, 0], sizes = [8, 32], strides = [1, 1]} : vector<8x64xf32> to vector<8x32xf32>
    %39 = vector.extract_strided_slice %37 {offsets = [0, 32], sizes = [8, 32], strides = [1, 1]} : vector<8x64xf32> to vector<8x32xf32>
    %40 = vector.extract_strided_slice %31 {offsets = [0, 0], sizes = [8, 8], strides = [1, 1]} : vector<8x32xf32> to vector<8x8xf32>
    %41 = vector.extract_strided_slice %31 {offsets = [0, 8], sizes = [8, 8], strides = [1, 1]} : vector<8x32xf32> to vector<8x8xf32>
    %42 = vector.extract_strided_slice %31 {offsets = [0, 16], sizes = [8, 8], strides = [1, 1]} : vector<8x32xf32> to vector<8x8xf32>
    %43 = vector.extract_strided_slice %31 {offsets = [0, 24], sizes = [8, 8], strides = [1, 1]} : vector<8x32xf32> to vector<8x8xf32>
    %44 = vector.shape_cast %40 : vector<8x8xf32> to vector<1x8x8xf32>
    %45 = vector.shape_cast %41 : vector<8x8xf32> to vector<1x8x8xf32>
    %46 = vector.shape_cast %42 : vector<8x8xf32> to vector<1x8x8xf32>
    %47 = vector.shape_cast %43 : vector<8x8xf32> to vector<1x8x8xf32>
    %48 = tpu.concatenate %44, %45, %46, %47 in 0 : vector<1x8x8xf32>, vector<1x8x8xf32>, vector<1x8x8xf32>, vector<1x8x8xf32> -> vector<4x8x8xf32>
    %49 = arith.truncf %48 : vector<4x8x8xf32> to vector<4x8x8xbf16>
    %50 = vector.extract_strided_slice %38 {offsets = [0, 0], sizes = [8, 8], strides = [1, 1]} : vector<8x32xf32> to vector<8x8xf32>
    %51 = vector.extract_strided_slice %38 {offsets = [0, 8], sizes = [8, 8], strides = [1, 1]} : vector<8x32xf32> to vector<8x8xf32>
    %52 = vector.extract_strided_slice %38 {offsets = [0, 16], sizes = [8, 8], strides = [1, 1]} : vector<8x32xf32> to vector<8x8xf32>
    %53 = vector.extract_strided_slice %38 {offsets = [0, 24], sizes = [8, 8], strides = [1, 1]} : vector<8x32xf32> to vector<8x8xf32>
    %54 = vector.shape_cast %50 : vector<8x8xf32> to vector<1x8x8xf32>
    %55 = vector.shape_cast %51 : vector<8x8xf32> to vector<1x8x8xf32>
    %56 = vector.shape_cast %52 : vector<8x8xf32> to vector<1x8x8xf32>
    %57 = vector.shape_cast %53 : vector<8x8xf32> to vector<1x8x8xf32>
    %58 = tpu.concatenate %54, %55, %56, %57 in 0 : vector<1x8x8xf32>, vector<1x8x8xf32>, vector<1x8x8xf32>, vector<1x8x8xf32> -> vector<4x8x8xf32>
    %59 = arith.truncf %58 : vector<4x8x8xf32> to vector<4x8x8xbf16>
    %60 = vector.extract_strided_slice %39 {offsets = [0, 0], sizes = [8, 8], strides = [1, 1]} : vector<8x32xf32> to vector<8x8xf32>
    %61 = vector.extract_strided_slice %39 {offsets = [0, 8], sizes = [8, 8], strides = [1, 1]} : vector<8x32xf32> to vector<8x8xf32>
    %62 = vector.extract_strided_slice %39 {offsets = [0, 16], sizes = [8, 8], strides = [1, 1]} : vector<8x32xf32> to vector<8x8xf32>
    %63 = vector.extract_strided_slice %39 {offsets = [0, 24], sizes = [8, 8], strides = [1, 1]} : vector<8x32xf32> to vector<8x8xf32>
    %64 = vector.shape_cast %60 : vector<8x8xf32> to vector<1x8x8xf32>
    %65 = vector.shape_cast %61 : vector<8x8xf32> to vector<1x8x8xf32>
    %66 = vector.shape_cast %62 : vector<8x8xf32> to vector<1x8x8xf32>
    %67 = vector.shape_cast %63 : vector<8x8xf32> to vector<1x8x8xf32>
    %68 = tpu.concatenate %64, %65, %66, %67 in 0 : vector<1x8x8xf32>, vector<1x8x8xf32>, vector<1x8x8xf32>, vector<1x8x8xf32> -> vector<4x8x8xf32>
    %69 = arith.truncf %68 : vector<4x8x8xf32> to vector<4x8x8xbf16>
    "tpu.trace_start"() <{level = 10 : i32, message = "hqd,hkd->hqk"}> : () -> ()
    %cst_20 = arith.constant dense<0.000000e+00> : vector<4x8x8xf32>
    %70 = tpu.matmul %49, %59, %cst_20 {dimension_numbers = #tpu.dot_dimension_numbers<[2], [2], [1], [1], [0, 0, 0, 1, 1, 1], [0], [0]>} : vector<4x8x8xbf16>, vector<4x8x8xbf16>, vector<4x8x8xf32> -> vector<4x8x8xf32>
    "tpu.trace_stop"() : () -> ()
    %cst_21 = arith.constant dense<0xFF800000> : vector<4x8xf32>
    %71 = vector.multi_reduction <maximumf>, %70, %cst_21 [2] : vector<4x8x8xf32> to vector<4x8xf32>
    %72 = vector.shape_cast %71 : vector<4x8xf32> to vector<4x8x1xf32>
    %73 = vector.broadcast %72 : vector<4x8x1xf32> to vector<4x8x8xf32>
    %74 = arith.subf %70, %73 : vector<4x8x8xf32>
    %75 = math.exp %74 : vector<4x8x8xf32>
    %cst_22 = arith.constant dense<0.000000e+00> : vector<4x8xf32>
    %76 = vector.multi_reduction <add>, %75, %cst_22 [2] : vector<4x8x8xf32> to vector<4x8xf32>
    %77 = vector.shape_cast %76 : vector<4x8xf32> to vector<4x8x1xf32>
    %78 = tpu.reciprocal %77 {approx = true} : vector<4x8x1xf32> -> vector<4x8x1xf32>
    %79 = vector.broadcast %78 : vector<4x8x1xf32> to vector<4x8x8xf32>
    %80 = arith.mulf %75, %79 : vector<4x8x8xf32>
    %81 = arith.truncf %80 : vector<4x8x8xf32> to vector<4x8x8xbf16>
    "tpu.trace_start"() <{level = 10 : i32, message = "hqk,hkd->hqd"}> : () -> ()
    %cst_23 = arith.constant dense<0.000000e+00> : vector<4x8x8xf32>
    %82 = tpu.matmul %81, %69, %cst_23 {dimension_numbers = #tpu.dot_dimension_numbers<[2], [1], [1], [2], [0, 0, 0, 1, 1, 2], [0], [0]>} : vector<4x8x8xbf16>, vector<4x8x8xbf16>, vector<4x8x8xf32> -> vector<4x8x8xf32>
    "tpu.trace_stop"() : () -> ()
    %83 = arith.truncf %82 : vector<4x8x8xf32> to vector<4x8x8xbf16>
    %c0_24 = arith.constant 0 : index
    %c0_25 = arith.constant 0 : index
    %c0_26 = arith.constant 0 : index
    %84 = vector.load %arg9[%c0_24, %c0_25, %c0_26] : memref<4x8x32xbf16, #tpu.memory_space<vmem>>, vector<4x8x32xbf16>
    "tpu.trace_start"() <{level = 10 : i32, message = "hqd,hde->hqe"}> : () -> ()
    %cst_27 = arith.constant dense<0.000000e+00> : vector<4x8x32xf32>
    %85 = tpu.matmul %83, %84, %cst_27 {dimension_numbers = #tpu.dot_dimension_numbers<[2], [1], [1], [2], [0, 0, 0, 1, 1, 2], [0], [0]>} : vector<4x8x8xbf16>, vector<4x8x32xbf16>, vector<4x8x32xf32> -> vector<4x8x32xf32>
    "tpu.trace_stop"() : () -> ()
    %cst_28 = arith.constant dense<0.000000e+00> : vector<8x32xf32>
    %86 = vector.multi_reduction <add>, %85, %cst_28 [0] : vector<4x8x32xf32> to vector<8x32xf32>
    %c0_29 = arith.constant 0 : index
    %c0_30 = arith.constant 0 : index
    %87 = vector.load %arg10[%c0_29, %c0_30] : memref<1x32xf32, #tpu.memory_space<vmem>>, vector<1x32xf32>
    %88 = vector.broadcast %87 : vector<1x32xf32> to vector<8x32xf32>
    %89 = arith.addf %86, %88 : vector<8x32xf32>
    %90 = arith.addf %1, %89 : vector<8x32xf32>
    %c0_31 = arith.constant 0 : index
    %c0_32 = arith.constant 0 : index
    %91 = vector.load %arg11[%c0_31, %c0_32] : memref<1x32xf32, #tpu.memory_space<vmem>>, vector<1x32xf32>
    %c0_33 = arith.constant 0 : index
    %c0_34 = arith.constant 0 : index
    %92 = vector.load %arg12[%c0_33, %c0_34] : memref<1x32xf32, #tpu.memory_space<vmem>>, vector<1x32xf32>
    %cst_35 = arith.constant dense<0.000000e+00> : vector<8xf32>
    %93 = vector.multi_reduction <add>, %90, %cst_35 [1] : vector<8x32xf32> to vector<8xf32>
    %94 = vector.shape_cast %93 : vector<8xf32> to vector<8x1xf32>
    %cst_36 = arith.constant 3.200000e+01 : f32
    %95 = vector.broadcast %cst_36 : f32 to vector<8x1xf32>
    %96 = arith.divf %94, %95 : vector<8x1xf32>
    %97 = vector.broadcast %96 : vector<8x1xf32> to vector<8x32xf32>
    %98 = arith.subf %90, %97 : vector<8x32xf32>
    %99 = arith.mulf %98, %98 : vector<8x32xf32>
    %cst_37 = arith.constant dense<0.000000e+00> : vector<8xf32>
    %100 = vector.multi_reduction <add>, %99, %cst_37 [1] : vector<8x32xf32> to vector<8xf32>
    %101 = vector.shape_cast %100 : vector<8xf32> to vector<8x1xf32>
    %cst_38 = arith.constant 3.200000e+01 : f32
    %102 = vector.broadcast %cst_38 : f32 to vector<8x1xf32>
    %103 = arith.divf %101, %102 : vector<8x1xf32>
    %104 = vector.broadcast %96 : vector<8x1xf32> to vector<8x32xf32>
    %105 = arith.subf %90, %104 : vector<8x32xf32>
    %cst_39 = arith.constant 9.99999974E-6 : f32
    %106 = vector.broadcast %cst_39 : f32 to vector<8x1xf32>
    %107 = arith.addf %103, %106 : vector<8x1xf32>
    %108 = math.rsqrt %107 : vector<8x1xf32>
    %109 = vector.broadcast %108 : vector<8x1xf32> to vector<8x32xf32>
    %110 = arith.mulf %105, %109 : vector<8x32xf32>
    %111 = vector.broadcast %91 : vector<1x32xf32> to vector<8x32xf32>
    %112 = arith.mulf %110, %111 : vector<8x32xf32>
    %113 = vector.broadcast %92 : vector<1x32xf32> to vector<8x32xf32>
    %114 = arith.addf %112, %113 : vector<8x32xf32>
    %115 = arith.truncf %114 : vector<8x32xf32> to vector<8x32xbf16>
    %c0_40 = arith.constant 0 : index
    %c0_41 = arith.constant 0 : index
    %116 = vector.load %arg13[%c0_40, %c0_41] : memref<32x128xbf16, #tpu.memory_space<vmem>>, vector<32x128xbf16>
    %cst_42 = arith.constant dense<0.000000e+00> : vector<8x128xf32>
    %117 = tpu.matmul %115, %116, %cst_42 {dimension_numbers = #tpu.dot_dimension_numbers<[1], [0], [0], [1], [0, 0, 1, 1], [], []>} : vector<8x32xbf16>, vector<32x128xbf16>, vector<8x128xf32> -> vector<8x128xf32>
    %c0_43 = arith.constant 0 : index
    %c0_44 = arith.constant 0 : index
    %118 = vector.load %arg14[%c0_43, %c0_44] : memref<1x128xf32, #tpu.memory_space<vmem>>, vector<1x128xf32>
    %119 = vector.broadcast %118 : vector<1x128xf32> to vector<8x128xf32>
    %120 = arith.addf %117, %119 : vector<8x128xf32>
    %cst_45 = arith.constant 1.702000e+00 : f32
    %121 = vector.broadcast %cst_45 : f32 to vector<8x128xf32>
    %122 = arith.mulf %121, %120 : vector<8x128xf32>
    %123 = arith.negf %122 : vector<8x128xf32>
    %124 = math.exp %123 : vector<8x128xf32>
    %cst_46 = arith.constant 1.000000e+00 : f32
    %125 = vector.broadcast %cst_46 : f32 to vector<8x128xf32>
    %126 = arith.addf %125, %124 : vector<8x128xf32>
    %127 = arith.divf %125, %126 : vector<8x128xf32>
    %128 = arith.mulf %120, %127 : vector<8x128xf32>
    %129 = arith.truncf %128 : vector<8x128xf32> to vector<8x128xbf16>
    %c0_47 = arith.constant 0 : index
    %c0_48 = arith.constant 0 : index
    %130 = vector.load %arg15[%c0_47, %c0_48] : memref<128x32xbf16, #tpu.memory_space<vmem>>, vector<128x32xbf16>
    %cst_49 = arith.constant dense<0.000000e+00> : vector<8x32xf32>
    %131 = tpu.matmul %129, %130, %cst_49 {dimension_numbers = #tpu.dot_dimension_numbers<[1], [0], [0], [1], [0, 0, 1, 1], [], []>} : vector<8x128xbf16>, vector<128x32xbf16>, vector<8x32xf32> -> vector<8x32xf32>
    %c0_50 = arith.constant 0 : index
    %c0_51 = arith.constant 0 : index
    %132 = vector.load %arg16[%c0_50, %c0_51] : memref<1x32xf32, #tpu.memory_space<vmem>>, vector<1x32xf32>
    %133 = vector.broadcast %132 : vector<1x32xf32> to vector<8x32xf32>
    %134 = arith.addf %131, %133 : vector<8x32xf32>
    %135 = arith.addf %90, %134 : vector<8x32xf32>
    %c0_52 = arith.constant 0 : index
    %c0_53 = arith.constant 0 : index
    %c0_54 = arith.constant 0 : index
    %136 = vector.load %arg17[%c0_52, %c0_53, %c0_54] : memref<1x8x32xf32, #tpu.memory_space<vmem>>, vector<1x8x32xf32>
    %137 = vector.shape_cast %136 : vector<1x8x32xf32> to vector<8x32xf32>
    %138 = vector.shape_cast %135 : vector<8x32xf32> to vector<1x8x32xf32>
    tpu.vector_store %arg17[%c0_52, %c0_53, %c0_54], %138 {strides = array<i32>} : memref<1x8x32xf32, #tpu.memory_space<vmem>>, vector<1x8x32xf32>,
    %cst_55 = arith.constant dense<0.000000e+00> : vector<8x8xf32>
    %139 = vector.multi_reduction <add>, %80, %cst_55 [0] : vector<4x8x8xf32> to vector<8x8xf32>
    %cst_56 = arith.constant 4.000000e+00 : f32
    %140 = vector.broadcast %cst_56 : f32 to vector<8x8xf32>
    %141 = arith.divf %139, %140 : vector<8x8xf32>
    %cst_57 = arith.constant 0.000000e+00 : f32
    %142 = vector.broadcast %cst_57 : f32 to vector<8x120xf32>
    %143 = tpu.concatenate %141, %142 in 1 : vector<8x8xf32>, vector<8x120xf32> -> vector<8x128xf32>
    %c0_58 = arith.constant 0 : index
    %c0_59 = arith.constant 0 : index
    %c0_60 = arith.constant 0 : index
    %144 = vector.load %arg18[%c0_58, %c0_59, %c0_60] : memref<1x8x128xf32, #tpu.memory_space<vmem>>, vector<1x8x128xf32>
    %145 = vector.shape_cast %144 : vector<1x8x128xf32> to vector<8x128xf32>
    %146 = vector.shape_cast %143 : vector<8x128xf32> to vector<1x8x128xf32>
    tpu.vector_store %arg18[%c0_58, %c0_59, %c0_60], %146 {strides = array<i32>} : memref<1x8x128xf32, #tpu.memory_space<vmem>>, vector<1x8x128xf32>,
    return
  }
  func.func @transform_0(%arg0: i32, %arg1: i32) -> (i32, i32, i32) {
    %c0_i32 = arith.constant 0 : i32
    %c0_i32_0 = arith.constant 0 : i32
    %c0_i32_1 = arith.constant 0 : i32
    return %arg0, %c0_i32, %c0_i32_0 : i32, i32, i32
  }
  func.func @transform_1(%arg0: i32, %arg1: i32) -> (i32, i32) {
    %c0_i32 = arith.constant 0 : i32
    %c0_i32_0 = arith.constant 0 : i32
    %c0_i32_1 = arith.constant 0 : i32
    return %c0_i32, %c0_i32_0 : i32, i32
  }
  func.func @transform_2(%arg0: i32, %arg1: i32) -> (i32, i32) {
    %c0_i32 = arith.constant 0 : i32
    %c0_i32_0 = arith.constant 0 : i32
    %c0_i32_1 = arith.constant 0 : i32
    return %c0_i32, %c0_i32_0 : i32, i32
  }
  func.func @transform_3(%arg0: i32, %arg1: i32) -> (i32, i32) {
    %c0_i32 = arith.constant 0 : i32
    %c0_i32_0 = arith.constant 0 : i32
    %c0_i32_1 = arith.constant 0 : i32
    return %c0_i32, %c0_i32_0 : i32, i32
  }
  func.func @transform_4(%arg0: i32, %arg1: i32) -> (i32, i32) {
    %c0_i32 = arith.constant 0 : i32
    %c0_i32_0 = arith.constant 0 : i32
    %c0_i32_1 = arith.constant 0 : i32
    return %c0_i32, %c0_i32_0 : i32, i32
  }
  func.func @transform_5(%arg0: i32, %arg1: i32) -> (i32, i32) {
    %c0_i32 = arith.constant 0 : i32
    %c0_i32_0 = arith.constant 0 : i32
    %c0_i32_1 = arith.constant 0 : i32
    return %c0_i32, %c0_i32_0 : i32, i32
  }
  func.func @transform_6(%arg0: i32, %arg1: i32) -> (i32, i32) {
    %c0_i32 = arith.constant 0 : i32
    %c0_i32_0 = arith.constant 0 : i32
    %c0_i32_1 = arith.constant 0 : i32
    return %c0_i32, %c0_i32_0 : i32, i32
  }
  func.func @transform_7(%arg0: i32, %arg1: i32) -> (i32, i32, i32) {
    %c0_i32 = arith.constant 0 : i32
    %c0_i32_0 = arith.constant 0 : i32
    %c0_i32_1 = arith.constant 0 : i32
    %c0_i32_2 = arith.constant 0 : i32
    return %c0_i32, %c0_i32_0, %c0_i32_1 : i32, i32, i32
  }
  func.func @transform_8(%arg0: i32, %arg1: i32) -> (i32, i32) {
    %c0_i32 = arith.constant 0 : i32
    %c0_i32_0 = arith.constant 0 : i32
    %c0_i32_1 = arith.constant 0 : i32
    return %c0_i32, %c0_i32_0 : i32, i32
  }
  func.func @transform_9(%arg0: i32, %arg1: i32) -> (i32, i32) {
    %c0_i32 = arith.constant 0 : i32
    %c0_i32_0 = arith.constant 0 : i32
    %c0_i32_1 = arith.constant 0 : i32
    return %c0_i32, %c0_i32_0 : i32, i32
  }
  func.func @transform_10(%arg0: i32, %arg1: i32) -> (i32, i32) {
    %c0_i32 = arith.constant 0 : i32
    %c0_i32_0 = arith.constant 0 : i32
    %c0_i32_1 = arith.constant 0 : i32
    return %c0_i32, %c0_i32_0 : i32, i32
  }
  func.func @transform_11(%arg0: i32, %arg1: i32) -> (i32, i32) {
    %c0_i32 = arith.constant 0 : i32
    %c0_i32_0 = arith.constant 0 : i32
    %c0_i32_1 = arith.constant 0 : i32
    return %c0_i32, %c0_i32_0 : i32, i32
  }
  func.func @transform_12(%arg0: i32, %arg1: i32) -> (i32, i32) {
    %c0_i32 = arith.constant 0 : i32
    %c0_i32_0 = arith.constant 0 : i32
    %c0_i32_1 = arith.constant 0 : i32
    return %c0_i32, %c0_i32_0 : i32, i32
  }
  func.func @transform_13(%arg0: i32, %arg1: i32) -> (i32, i32) {
    %c0_i32 = arith.constant 0 : i32
    %c0_i32_0 = arith.constant 0 : i32
    %c0_i32_1 = arith.constant 0 : i32
    return %c0_i32, %c0_i32_0 : i32, i32
  }
  func.func @transform_14(%arg0: i32, %arg1: i32) -> (i32, i32) {
    %c0_i32 = arith.constant 0 : i32
    %c0_i32_0 = arith.constant 0 : i32
    %c0_i32_1 = arith.constant 0 : i32
    return %c0_i32, %c0_i32_0 : i32, i32
  }
  func.func @transform_15(%arg0: i32, %arg1: i32) -> (i32, i32, i32) {
    %c0_i32 = arith.constant 0 : i32
    %c0_i32_0 = arith.constant 0 : i32
    return %arg0, %arg1, %c0_i32 : i32, i32, i32
  }
  func.func @transform_16(%arg0: i32, %arg1: i32) -> (i32, i32, i32) {
    %c0_i32 = arith.constant 0 : i32
    %c0_i32_0 = arith.constant 0 : i32
    return %arg0, %arg1, %c0_i32 : i32, i32, i32
  }
}

</mosaic_0001>

<bundles_post_ra>
// kernel: residual_attention_block.1
= control target key start
LH: loop header
LB: loop body
LE: loop exit
PB: predicated region body
PF: predicated region fallthrough
CT: control target
= control target key end

     0   :  { %s2544_s0 = inlined_call_operand.vmem [shape: f32[2,8,32], index: 0, kind: input, shape index: {}]   ;;  %s2545_s1 = inlined_call_operand.vmem [shape: f32[1,32], index: 1, kind: input, shape index: {}]   ;;  %s2546_s2 = inlined_call_operand.vmem [shape: f32[1,32], index: 2, kind: input, shape index: {}]   ;;  %s2547_s3 = inlined_call_operand.vmem [shape: bf16[32,32], index: 3, kind: input, shape index: {}]   ;;  %s2548_s4 = inlined_call_operand.vmem [shape: f32[1,32], index: 4, kind: input, shape index: {}]   ;;  %s2549_s5 = inlined_call_operand.vmem [shape: bf16[32,64], index: 5, kind: input, shape index: {}]   ;;  %s2550_s6 = inlined_call_operand.vmem [shape: f32[1,64], index: 6, kind: input, shape index: {}]   ;;  %s2551_s7 = inlined_call_operand.vmem [shape: bf16[4,8,32], index: 7, kind: input, shape index: {}]   ;;  %s2552_s8 = inlined_call_operand.vmem [shape: f32[1,32], index: 8, kind: input, shape index: {}]   ;;  %s2553_s9 = inlined_call_operand.vmem [shape: f32[1,32], index: 9, kind: input, shape index: {}]   ;;  %s2554_s10 = inlined_call_operand.vmem [shape: f32[1,32], index: 10, kind: input, shape index: {}]   ;;  %s2555_s11 = inlined_call_operand.vmem [shape: bf16[32,128], index: 11, kind: input, shape index: {}]   ;;  %s2556_s12 = inlined_call_operand.vmem [shape: f32[1,128], index: 12, kind: input, shape index: {}]   ;;  %s2557_s13 = inlined_call_operand.vmem [shape: bf16[128,32], index: 13, kind: input, shape index: {}]   ;;  %s2558_s14 = inlined_call_operand.vmem [shape: f32[1,32], index: 14, kind: input, shape index: {}]   ;;  %s2559_s15 = inlined_call_operand.vmem [shape: f32[2,8,32], index: 15, kind: output, shape index: {0}]   ;;  %s2560_s16 = inlined_call_operand.hbm [shape: f32[2,8,128], index: 16, kind: output, shape index: {1}]  }
   0x1   :  { %2566 = sst [smem:[#allocation8_spill]] %s2544_s0 }
   0x2   :  { %2567 = sst [smem:[#allocation9_spill]] %s2545_s1 }
   0x3   :  { %2568 = sst [smem:[#allocation10_spill]] %s2546_s2 }
   0x4   :  { %2569 = sst [smem:[#allocation11_spill]] %s2547_s3 }
   0x5   :  { %2570 = sst [smem:[#allocation12_spill]] %s2548_s4 }
   0x6   :  { %2571 = sst [smem:[#allocation13_spill]] %s2549_s5 }
   0x7   :  { %2572 = sst [smem:[#allocation14_spill]] %s2550_s6 }
   0x8   :  { %22 = vsyncpa [#allocation3], 0 }
   0x9   :  { %24 = vsyncpa [#allocation3 + $0x1], 0  ;;  %s2210_s21 = smov 0   ;;  %s2212_s22 = smov 0  }
   0xa   :  { %s2214_s23 = smov 0   ;;  %s2216_s24 = smov 0  }
   0xb   :  { %s2218_s25 = smov 0   ;;  %s2220_s26 = smov 0  }
   0xc LB: > { %2573 = sst [smem:[#allocation5_spill]] %s2112_s25  ;;  %s1732_s27 = sadd.s32 4294967295, %s2116_s26   ;;  %s2116_s26 = sphi %s2220_s26, %s30_s26   ;;  %s2112_s25 = sphi %s2218_s25, %s2590_s25   ;;  %s2108_s24 = sphi %s2216_s24, %s2589_s24   ;;  %s2104_s23 = sphi %s2214_s23, %s2593_s23   ;;  %s2100_s22 = sphi %s2212_s22, %s2592_s22   ;;  %s2096_s21 = sphi %s2210_s21, %s2591_s21  }
   0xd   : > { %s1733_s28 = sadd.s32 4294967294, %s2116_s26   ;;  %s42_s29 = sadd.s32 1, %s2112_s25 }
   0xe   : > { %s399_s30 = sadd.s32 1, %s2104_s23  ;;  %p44_p0 = scmp.ge.s32.totalorder %s42_s29, 2 }
   0xf   : > { %p409_p1 = scmp.ne.s32.totalorder %s2104_s23, %s2100_s22  ;;  %p410_p2 = scmp.eq.s32.totalorder %s1732_s27, 1 }
  0x10   : > { %p415_p3 = scmp.ne.s32.totalorder %s2100_s22, %s2096_s21  ;;  %s2595_s29 = smov (%p44_p0, %s42_s29), 0 }
  0x11   : > { %2574 = sst [smem:[#allocation6_spill]] %s2595_s29  ;;  %p2250_p4 = por %p410_p2, %p409_p1 }
  0x12   : > { %p416_p5 = scmp.eq.s32.totalorder %s1733_s28, 1  ;;  %s394_s17 = ssub.s32 %s2112_s25, %s2595_s29 }
  0x13   : > { %p1736_p6 = scmp.ge.s32.totalorder %s2116_s26, 1  ;;  %p397_p7 = scmp.eq.s32.totalorder %s394_s17, 0 }
  0x14   : > { %p2257_p8 = por %p416_p5, %p415_p3  ;;  %p483_p9 = scmp.lt.s32.totalorder %s2116_s26, 3 }
  0x15   : > { %s2263_s19 = scalar_select %p397_p7, %s2104_s23, %s399_s30  }
  0x16   : > { %p484_p10 = pnand %p1736_p6, %p483_p9 }
  0x17   : > { %2577 = sst [smem:[#allocation7_spill]] %s2263_s19  ;;  %p539_p11 = scmp.lt.s32.totalorder (!%p484_p10), %s2108_s24, 1 }
  0x18   : > { %487 = sbr.rel (%p484_p10) target bundleno = 2324 (0x914), region = 80  ;;  %s2578_s29 = sld [smem:[#allocation8_spill]] (!%p484_p10) }
  0x19   : > { %s2579_s3 = sld [smem:[#allocation11_spill]] (!%p484_p10)  ;;  %s2121_s30 = smov (!%p484_p10), 112  }
  0x1a   : > { %s2580_s1 = sld [smem:[#allocation9_spill]] (!%p484_p10)  ;;  %s2564_s17 = sand.u32 (!%p484_p10), 1, %s2100_s22  }
  0x1b   : > { %s2581_s2 = sld [smem:[#allocation10_spill]] (!%p484_p10) }
  0x1c   : > { %s2582_s5 = sld [smem:[#allocation13_spill]] (!%p484_p10) }
  0x1d   : > { %s2267_s20 = scalar_select %p539_p11, %s2108_s24, 1  ;;  %vm554_vm0 = vcmask 261120   ;;  %v2118_v8 = vmov 0.0   ;;  %vm2119_vm1 = vmmov 0   ;;  %vm741_vm2 = vcmask 64512  }
  0x1e   : > { %1825 = vmatprep.subr.bf16.mxu0 %v2118_v8  ;;  %1829 = vmatprep.mubr.msk.bf16.mxu0 %vm2119_vm1, %v2118_v8  ;;  %s2583_s4 = sld [smem:[#allocation12_spill]]  ;;  %vm980_vm3 = vcmask 1043456  }
  0x1f   : > { %s2563_s27 = sshll.u32 %s2267_s20, 3  ;;  %v2002_v7 = vld [vmem:[%s2579_s3 + $0x8] sm:$0xff]   ;;  %v2003_v9 = vld [vmem:[%s2579_s3] sm:$0xff]   ;;  %1847 = vmatprep.subr.bf16.mxu1 %v2118_v8  ;;  %1849 = vmatprep.mubr.msk.bf16.mxu1 %vm2119_vm1, %v2118_v8  ;;  %s2120_s3 = smov 120  }
  0x20   : > { %s542_s25 = scalar_lea.vmem %s2578_s29, %s2563_s27  ;;  %1826 = vmatpush3.bf16.msra.mxu0 %v2002_v7  ;;  %v1740_v14 = vld [vmem:[%s2580_s1] ss:$0 sm:$0xff]  ;;  %s2584_s6 = sld [smem:[#allocation14_spill]] }
  0x21   : > { %v2275_v0 = vld [vmem:[%s542_s25] sm:$0xff]  ;;  %1827 = vmatprep.subr.bf16.mxu0 %v2118_v8  ;;  %s2122_s25 = smov 104   ;;  %s2123_s29 = smov 96  }
  0x22   : > { %v555_v1 = vsel %vm554_vm0, %v2275_v0, 0.0  ;;  %v1741_v16 = vld [vmem:[%s2581_s2] ss:$0 sm:$0xff]  ;;  %v2004_v19 = vld [vmem:[%s2582_s5 + $0x8] sm:$0xff]   ;;  %s1780_s1 = sshll.u32 %s2108_s24, 7  ;;  %s2586_s27 = sand.u32 1, %s2100_s22  }
  0x23   : > { %556 = vadd.xlane.f32.xlu0 %v555_v1  ;;  %v2005_v21 = vld [vmem:[%s2582_s5] sm:$0xff]  }
  0x24   : > { %1828 = vmatpush3.bf16.msra.mxu0 %v2003_v9  ;;  %v1742_v22 = vld [vmem:[%s2583_s4] ss:$0 sm:$0xff]  ;;  %s2124_s4 = smov [#allocation2]  }
  0x25   : > { %1833 = vmatprep.subr.bf16.mxu0 %v2118_v8  ;;  %s2044_s5 = sshll.u32 %s2124_s4, 4  ;;  %s2045_s5 = int_to_ptr.vmem [resolvable:$false] %s2044_s5 }
  0x26   : > { %v1746_v28 = vld [vmem:[%s2584_s6] ss:$0 sm:$0xff]  ;;  %s2046_s6 = scalar_lea.vmem %s2045_s5, 256 }
  0xac   : > { %v557_v2 = vpop.xlane.xlu0 %556 }
  0xad   : > { %v559_v3 = vmul.f32 0.03125, %v557_v2 }
  0xaf   : > { %v560_v4 = vsub.f32 %v2275_v0, %v559_v3 }
  0xb1   : > { %v561_v5 = vmul.f32 %v560_v4, %v560_v4 }
  0xb3   : > { %v562_v6 = vsel %vm554_vm0, %v561_v5, 0.0 }
  0xb4   : > { %563 = vadd.xlane.f32.xlu0 %v562_v6 }
 0x13d   : > { %v564_v10 = vpop.xlane.xlu0 %563 }
 0x13e   : > { %v565_v11 = vmul.f32 0.03125, %v564_v10 }
 0x140   : > { %v566_v12 = vadd.f32 1e-05, %v565_v11 }
 0x142   : > { %2016 = vrsqrt.f32 %v566_v12 }
 0x14f   : > { %v2017_v13 = vpop.eup %2016 }
 0x150   : > { %v568_v15 = vmul.f32 %v2017_v13, %v560_v4 }
 0x152   : > { %v575_v17 = vmul.f32 %v1740_v14, %v568_v15 }
 0x154   : > { %v582_v18 = vadd.f32 %v1741_v16, %v575_v17 }
 0x156   : > { %v583_v20 = vpack.c.bf16 %v582_v18, %v582_v18 }
 0x158   : > { %1830 = vmatmul.mubr.msk.bf16.vlgmr.msra.gmra.mxu0 %vm554_vm0, %v583_v20 }
 0x159   : > { %1834 = vmatpush3.bf16.msra.mxu0 %v2004_v19  ;;  %1837 = vmatprep.mubr.msk.bf16.mxu0 %vm2119_vm1, %v2118_v8 }
 0x15a   : > { %1835 = vmatprep.subr.bf16.mxu0 %v2118_v8 }
 0x15d   : > { %1836 = vmatpush3.bf16.msra.mxu0 %v2005_v21 }
 0x15e   : > { %1841 = vmatprep.subr.bf16.mxu0 %v2118_v8 }
 0x160   : > { %1838 = vmatmul.mubr.msk.bf16.vlgmr.msra.gmra.mxu0 %vm554_vm0, %v583_v20 }
 0x161   : > { %1843 = vmatprep.mubr.msk.bf16.mxu0 %vm2119_vm1, %v2118_v8 }
 0x218   : > { %v644_v23 = vpop.f32.mrf.mxu0 }
 0x219   : > { %v645_v24 = vadd.f32 %v1742_v22, %v644_v23 }
 0x21a   : > { %v1831_v25 = vpop.f32.mrf.mxu0 }
 0x21b   : > { %714 = vrot.lane.b32.xlu0 %v645_v24, %s2120_s3  ;;  %v723_v36 = vpack.c.bf16 %v645_v24, %v645_v24 }
 0x21c   : > { %v647_v26 = vpop.f32.mrf.mxu0 }
 0x21e   : > { %v1832_v27 = vpop.f32.mrf.mxu0 }
 0x220   : > { %v707_v29 = vpop.f32.mrf.mxu0 }
 0x221   : > { %v708_v30 = vadd.f32 %v1746_v28, %v707_v29 }
 0x222   : > { %v1839_v31 = vpop.f32.mrf.mxu0 }
 0x223   : > { %728 = vrot.lane.b32.xlu1 %v708_v30, %s2120_s3  ;;  %v2321_v32 = vpack.c.bf16 %v708_v30, %v708_v30  ;;  %s1631_s3 = scalar_lea.hbm %s2560_s16, %s1780_s1 }
 0x224   : > { %v710_v33 = vpop.f32.mrf.mxu0 }
 0x225   : > { %v746_v34 = vsel %vm741_vm2, %v2321_v32, 0 }
 0x226   : > { %v1840_v35 = vpop.f32.mrf.mxu0  ;;  %1842 = vmatpush3.bf16.xpose.msra.mxu0 %v746_v34 }
 0x227   : > { %731 = vrot.lane.b32.xlu1 %v708_v30, %s2121_s30  ;;  %1853 = vmatprep.subr.bf16.mxu0 %v2118_v8 }
 0x22b   : > { %734 = vrot.lane.b32.xlu1 %v708_v30, %s2122_s25 }
 0x22d   : > { %1844 = vmatmul.mubr.msk.bf16.vlgmr.msra.gmra.mxu0 %vm741_vm2, %v723_v36 }
 0x22e   : > { %1855 = vmatprep.mubr.msk.bf16.mxu0 %vm2119_vm1, %v2118_v8 }
 0x22f   : > { %717 = vrot.lane.b32.xlu1 %v645_v24, %s2121_s30  ;;  %s2397_s30 = sshll.u32 %s2564_s17, 3 }
 0x230   : > { %s2585_s17 = scalar_lea.vmem [#allocation2], %s2397_s30 }
 0x233   : > { %720 = vrot.lane.b32.xlu1 %v645_v24, %s2122_s25  ;;  %s2565_s25 = scalar_lea.vmem [#allocation2], %s2397_s30 }
 0x28d   : > { %v715_v42 = vpop.permute.xlu0 %714 }
 0x28e   : > { %v724_v45 = vpack.c.bf16 %v715_v42, %v715_v42 }
 0x295   : > { %v729_v37 = vpop.permute.xlu1 %728 }
 0x296   : > { %v738_v38 = vpack.c.bf16 %v729_v37, %v729_v37 }
 0x298   : > { %v792_v39 = vsel %vm741_vm2, %v738_v38, 0 }
 0x299   : > { %1848 = vmatpush3.bf16.xpose.msra.mxu1 %v792_v39  ;;  %v732_v40 = vpop.permute.xlu1 %731 }
 0x29a   : > { %v2330_v41 = vpack.c.bf16 %v732_v40, %v732_v40  ;;  %1859 = vmatprep.subr.bf16.mxu1 %v2118_v8 }
 0x29c   : > { %v838_v43 = vsel %vm741_vm2, %v2330_v41, 0 }
 0x29d   : > { %v735_v44 = vpop.permute.xlu1 %734  ;;  %1854 = vmatpush3.bf16.xpose.msra.mxu0 %v838_v43 }
 0x29e   : > { %v2335_v46 = vpack.c.bf16 %v735_v44, %v735_v44  ;;  %1865 = vmatprep.subr.bf16.mxu0 %v2118_v8 }
 0x2a0   : > { %v884_v47 = vsel %vm741_vm2, %v2335_v46, 0  ;;  %1850 = vmatmul.mubr.msk.bf16.vlgmr.msra.gmra.mxu1 %vm741_vm2, %v724_v45 }
 0x2a1   : > { %1860 = vmatpush3.bf16.xpose.msra.mxu1 %v884_v47  ;;  %v718_v48 = vpop.permute.xlu1 %717  ;;  %1861 = vmatprep.mubr.msk.bf16.mxu1 %vm2119_vm1, %v2118_v8 }
 0x2a2   : > { %v725_v49 = vpack.c.bf16 %v718_v48, %v718_v48  ;;  %1871 = vmatprep.subr.bf16.mxu1 %v2118_v8  ;;  %v1175_v48 = vld [vmem:[%s2551_s7] sm:$0xf] }
 0x2a4   : > { %1856 = vmatmul.mubr.msk.bf16.vlgmr.msra.gmra.mxu0 %vm741_vm2, %v725_v49 }
 0x2a5   : > { %v721_v50 = vpop.permute.xlu1 %720  ;;  %1867 = vmatprep.mubr.msk.bf16.mxu0 %vm2119_vm1, %v2118_v8 }
 0x2a6   : > { %v726_v51 = vpack.c.bf16 %v721_v50, %v721_v50 }
 0x2a8   : > { %1862 = vmatmul.mubr.msk.bf16.vlgmr.msra.gmra.mxu1 %vm741_vm2, %v726_v51 }
 0x2a9   : > { %1873 = vmatprep.mubr.msk.bf16.mxu1 %vm2119_vm1, %v2118_v8 }
 0x2ed   : > { %v782_v52 = vpop.f32.mrf.mxu0 }
 0x2ee   : > { %v926_v53 = vsel %vm741_vm2, %v782_v52, -inf }
 0x2ef   : > { %927 = vmax.xlane.f32.xlu1 %v926_v53  ;;  %v1845_v54 = vpop.f32.mrf.mxu0  ;;  %v1183_v53 = vsel %vm980_vm3, %v1175_v48, 0 }
 0x2f1   : > { %v785_v55 = vpop.f32.mrf.mxu0 }
 0x2f3   : > { %v1846_v56 = vpop.f32.mrf.mxu0 }
 0x360   : > { %v828_v57 = vpop.f32.mrf.mxu1 }
 0x361   : > { %v929_v58 = vsel %vm741_vm2, %v828_v57, -inf }
 0x362   : > { %930 = vmax.xlane.f32.xlu0 %v929_v58  ;;  %v1851_v59 = vpop.f32.mrf.mxu1 }
 0x364   : > { %v831_v60 = vpop.f32.mrf.mxu1  ;;  %v874_v61 = vpop.f32.mrf.mxu0 }
 0x365   : > { %v932_v62 = vsel %vm741_vm2, %v874_v61, -inf }
 0x366   : > { %v1852_v63 = vpop.f32.mrf.mxu1  ;;  %933 = vmax.xlane.f32.xlu1 %v932_v62  ;;  %v1857_v1 = vpop.f32.mrf.mxu0 }
 0x368   : > { %v877_v2 = vpop.f32.mrf.mxu0  ;;  %v920_v3 = vpop.f32.mrf.mxu1 }
 0x369   : > { %v935_v4 = vsel %vm741_vm2, %v920_v3, -inf }
 0x36a   : > { %v1863_v5 = vpop.f32.mrf.mxu1  ;;  %936 = vmax.xlane.f32.xlu1 %v935_v4  ;;  %v1858_v6 = vpop.f32.mrf.mxu0  ;;  %v1177_v4 = vld [vmem:[%s2551_s7 + $0x8] sm:$0xf] }
 0x36c   : > { %v923_v7 = vpop.f32.mrf.mxu1 }
 0x36d   : > { %v1275_v7 = vsel %vm980_vm3, %v1177_v4, 0 }
 0x36e   : > { %v1864_v9 = vpop.f32.mrf.mxu1 }
 0x378   : > { %v928_v10 = vpop.xlane.xlu1 %927 }
 0x379   : > { %v938_v11 = vsub.f32 %v782_v52, %v928_v10 }
 0x37b   : > { %v942_v12 = vmul.f32 1.442695, %v938_v11  ;;  %1025 = vrot.lane.b32.xlu1 %v738_v38, %s2123_s29 }
 0x37d   : > { %2018 = vpow2.f32 %v942_v12  ;;  %v1178_v12 = vld [vmem:[%s2551_s7 + $0xc] sm:$0xf] }
 0x38a   : > { %v2019_v13 = vpop.eup %2018 }
 0x38b   : > { %v950_v14 = vsel %vm741_vm2, %v2019_v13, 0.0 }
 0x38c   : > { %951 = vadd.xlane.f32.xlu0 %v950_v14 }
 0x3a2   : > { %975 = vrot.lane.b32.xlu0 %v2321_v32, %s2123_s29 }
 0x3eb   : > { %v931_v15 = vpop.xlane.xlu0 %930 }
 0x3ec   : > { %v939_v16 = vsub.f32 %v828_v57, %v931_v15  ;;  %v1176_v57 = vld [vmem:[%s2551_s7 + $0x4] sm:$0xf]  ;;  %v1321_v15 = vsel %vm980_vm3, %v1178_v12, 0  ;;  %v2010_v12 = vld [vmem:[%s2557_s13 + $0x28] sm:$0xff]  }
 0x3ed   : > { %v1229_v62 = vsel %vm980_vm3, %v1176_v57, 0 }
 0x3ee   : > { %v944_v17 = vmul.f32 1.442695, %v939_v16 }
 0x3ef   : > { %v934_v18 = vpop.xlane.xlu1 %933 }
 0x3f0   : > { %2020 = vpow2.f32 %v944_v17  ;;  %v940_v19 = vsub.f32 %v874_v61, %v934_v18 }
 0x3f2   : > { %v946_v20 = vmul.f32 1.442695, %v940_v19 }
 0x3f3   : > { %v937_v21 = vpop.xlane.xlu1 %936 }
 0x3f4   : > { %2022 = vpow2.f32 %v946_v20  ;;  %v941_v22 = vsub.f32 %v920_v3, %v937_v21 }
 0x3f6   : > { %v948_v23 = vmul.f32 1.442695, %v941_v22 }
 0x3f7   : > { %v1026_v24 = vpop.permute.xlu1 %1025 }
 0x3f8   : > { %2024 = vpow2.f32 %v948_v23  ;;  %v1031_v25 = vsel %vm980_vm3, %v1026_v24, 0 }
 0x3f9   : > { %1872 = vmatpush3.bf16.msra.mxu1 %v1031_v25 }
 0x3fa   : > { %1883 = vmatprep.subr.bf16.mxu1 %v2118_v8 }
 0x3fd   : > { %v2021_v26 = vpop.eup %2020 }
 0x3fe   : > { %v953_v27 = vsel %vm741_vm2, %v2021_v26, 0.0 }
 0x3ff   : > { %954 = vadd.xlane.f32.xlu1 %v953_v27 }
 0x401   : > { %v2023_v28 = vpop.eup %2022 }
 0x402   : > { %v956_v29 = vsel %vm741_vm2, %v2023_v28, 0.0 }
 0x403   : > { %957 = vadd.xlane.f32.xlu0 %v956_v29 }
 0x405   : > { %v2025_v30 = vpop.eup %2024 }
 0x406   : > { %v959_v31 = vsel %vm741_vm2, %v2025_v30, 0.0 }
 0x407   : > { %960 = vadd.xlane.f32.xlu1 %v959_v31 }
 0x415   : > { %v952_v32 = vpop.xlane.xlu0 %951 }
 0x416   : > { %2026 = vrcp.f32 %v952_v32 }
 0x418   : > { %1074 = vrot.lane.b32.xlu1 %v2330_v41, %s2123_s29 }
 0x419   : > { %v976_v33 = vpop.permute.xlu0 %975  ;;  %1123 = vrot.lane.b32.xlu0 %v2335_v46, %s2123_s29  ;;  %s1633_s29 = sshll.u32 %s2585_s17, 4  ;;  %s1634_s29 = int_to_ptr.vmem [resolvable:$true] %s1633_s29 }
 0x41a   : > { %v982_v34 = vsel %vm980_vm3, %v976_v33, 0  ;;  %s2040_s2 = scalar_lea.vmem %s1634_s29, 128  ;;  %p2047_p1 = scmp.lt.s32.totalorder %s1634_s29, %s2045_s5 }
 0x41b   : > { %1866 = vmatpush3.bf16.msra.mxu0 %v982_v34  ;;  %p2041_p12 = scmp.ne.s32.totalorder %s1634_s29, %s2040_s2  ;;  %p2048_p2 = scmp.lt.s32.totalorder %s2046_s6, %s2040_s2 }
 0x41c   : > { %1877 = vmatprep.subr.bf16.mxu0 %v2118_v8 }
 0x41d   : > { %p2042_p13 = pnand %p2041_p12, %p2250_p4  ;;  %p2049_p3 = por %p2048_p2, %p2047_p1 }
 0x41f   : > { %p2043_p0 = pneg %p2042_p13 }
 0x421   : > { %p2050_p5 = pnand %p2049_p3, %p2043_p0 }
 0x423   : > { %v2027_v35 = vpop.eup %2026 }
 0x424   : > { %v966_v36 = vmul.f32 %v2027_v35, %v2019_v13 }
 0x426   : > { %v970_v37 = vpack.c.bf16 %v966_v36, %v966_v36  ;;  %v1597_v54 = vsel %vm741_vm2, %v966_v36, 0.0 }
 0x428   : > { %1868 = vmatmul.mubr.msk.bf16.vlgmr.msra.gmra.mxu0 %vm741_vm2, %v970_v37 }
 0x429   : > { %1879 = vmatprep.mubr.msk.bf16.mxu0 %vm2119_vm1, %v2118_v8 }
 0x488   : > { %v955_v38 = vpop.xlane.xlu1 %954 }
 0x489   : > { %2028 = vrcp.f32 %v955_v38 }
 0x48c   : > { %v958_v39 = vpop.xlane.xlu0 %957 }
 0x48d   : > { %2030 = vrcp.f32 %v958_v39 }
 0x490   : > { %v961_v40 = vpop.xlane.xlu1 %960  ;;  %v1124_v45 = vpop.permute.xlu0 %1123 }
 0x491   : > { %2032 = vrcp.f32 %v961_v40  ;;  %v1129_v49 = vsel %vm980_vm3, %v1124_v45, 0 }
 0x494   : > { %v1075_v41 = vpop.permute.xlu1 %1074 }
 0x495   : > { %v1080_v42 = vsel %vm980_vm3, %v1075_v41, 0 }
 0x496   : > { %v2029_v43 = vpop.eup %2028  ;;  %1878 = vmatpush3.bf16.msra.mxu0 %v1080_v42 }
 0x497   : > { %v967_v44 = vmul.f32 %v2029_v43, %v2021_v26  ;;  %1889 = vmatprep.subr.bf16.mxu0 %v2118_v8 }
 0x499   : > { %v971_v46 = vpack.c.bf16 %v967_v44, %v967_v44  ;;  %v1598_v51 = vsel %vm741_vm2, %v967_v44, 0.0 }
 0x49a   : > { %v2031_v47 = vpop.eup %2030  ;;  %v1599_v58 = vadd.f32 %v1598_v51, %v1597_v54 }
 0x49b   : > { %1874 = vmatmul.mubr.msk.bf16.vlgmr.msra.gmra.mxu1 %vm741_vm2, %v971_v46  ;;  %v968_v50 = vmul.f32 %v2031_v47, %v2023_v28  ;;  %v1762_v47 = vld [vmem:[%s2552_s8] ss:$0 sm:$0xff] }
 0x49c   : > { %1884 = vmatpush3.bf16.msra.mxu1 %v1129_v49  ;;  %1885 = vmatprep.mubr.msk.bf16.mxu1 %vm2119_vm1, %v2118_v8 }
 0x49d   : > { %v972_v52 = vpack.c.bf16 %v968_v50, %v968_v50  ;;  %1895 = vmatprep.subr.bf16.mxu1 %v2118_v8  ;;  %v1600_v55 = vsel %vm741_vm2, %v968_v50, 0.0 }
 0x49e   : > { %v2033_v56 = vpop.eup %2032  ;;  %v1601_v60 = vadd.f32 %v1600_v55, %v1599_v58 }
 0x49f   : > { %1880 = vmatmul.mubr.msk.bf16.vlgmr.msra.gmra.mxu0 %vm741_vm2, %v972_v52  ;;  %v969_v59 = vmul.f32 %v2033_v56, %v2025_v30 }
 0x4a0   : > { %1890 = vmatpush3.bf16.msra.mxu0 %v1183_v53  ;;  %1891 = vmatprep.mubr.msk.bf16.mxu0 %vm2119_vm1, %v2118_v8 }
 0x4a1   : > { %v973_v61 = vpack.c.bf16 %v969_v59, %v969_v59  ;;  %1901 = vmatprep.subr.bf16.mxu0 %v2118_v8  ;;  %v1602_v63 = vsel %vm741_vm2, %v969_v59, 0.0 }
 0x4a2   : > { %v1603_v1 = vadd.f32 %v1602_v63, %v1601_v60 }
 0x4a3   : > { %1886 = vmatmul.mubr.msk.bf16.vlgmr.msra.gmra.mxu1 %vm741_vm2, %v973_v61  ;;  %v2006_v61 = vld [vmem:[%s2555_s11 + $0x8] sm:$0xff]  }
 0x4a4   : > { %1896 = vmatpush3.bf16.msra.mxu1 %v1229_v62  ;;  %1897 = vmatprep.mubr.msk.bf16.mxu1 %vm2119_vm1, %v2118_v8  ;;  %v1605_v2 = vmul.f32 0.25, %v1603_v1 }
 0x4a5   : > { %1907 = vmatprep.subr.bf16.mxu1 %v2118_v8 }
 0x4a6   : > { %v1606_v3 = vsel %vm741_vm2, %v1605_v2, 0.0 }
 0x4a7   : > { %1607 = vst [vmem:[%s2565_s25] sm:$0xff] %v1606_v3  ;;  %v1763_v3 = vld [vmem:[%s2553_s9] ss:$0 sm:$0xff]  ;;  %s1616_s25 = scalar_lea.sflag [#allocation3], %s2586_s27 }
 0x4e8   : > { %v1018_v5 = vpop.f32.mrf.mxu0 }
 0x4e9   : > { %v1171_v6 = vpack.c.bf16 %v1018_v5, %v1018_v5  ;;  %v1764_v5 = vld [vmem:[%s2554_s10] ss:$0 sm:$0xff] }
 0x4ea   : > { %v1869_v9 = vpop.f32.mrf.mxu0 }
 0x4eb   : > { %1892 = vmatmul.mubr.msk.bf16.vlgmr.msra.gmra.mxu0 %vm741_vm2, %v1171_v6 }
 0x4ec   : > { %v1021_v10 = vpop.f32.mrf.mxu0  ;;  %1902 = vmatpush3.bf16.msra.mxu0 %v1275_v7  ;;  %1903 = vmatprep.mubr.msk.bf16.mxu0 %vm2119_vm1, %v2118_v8 }
 0x4ed   : > { %1913 = vmatprep.subr.bf16.mxu0 %v2118_v8  ;;  %v2008_v10 = vld [vmem:[%s2557_s13 + $0x38] sm:$0xff]  }
 0x4ee   : > { %v1870_v11 = vpop.f32.mrf.mxu0 }
 0x4ef   : > { %v2009_v11 = vld [vmem:[%s2557_s13 + $0x30] sm:$0xff]  }
 0x55b   : > { %v1067_v13 = vpop.f32.mrf.mxu1 }
 0x55c   : > { %v1172_v14 = vpack.c.bf16 %v1067_v13, %v1067_v13  ;;  %v2011_v13 = vld [vmem:[%s2557_s13 + $0x20] sm:$0xff]  }
 0x55d   : > { %v1875_v16 = vpop.f32.mrf.mxu1 }
 0x55e   : > { %1898 = vmatmul.mubr.msk.bf16.vlgmr.msra.gmra.mxu1 %vm741_vm2, %v1172_v14  ;;  %v2012_v14 = vld [vmem:[%s2557_s13 + $0x18] sm:$0xff]   ;;  %v2014_v16 = vld [vmem:[%s2557_s13 + $0x8] sm:$0xff]  }
 0x55f   : > { %v1070_v17 = vpop.f32.mrf.mxu1  ;;  %v1116_v18 = vpop.f32.mrf.mxu0  ;;  %1908 = vmatpush3.bf16.msra.mxu1 %v1321_v15  ;;  %1909 = vmatprep.mubr.msk.bf16.mxu1 %vm2119_vm1, %v2118_v8  ;;  %v2013_v15 = vld [vmem:[%s2557_s13 + $0x10] sm:$0xff]  }
 0x560   : > { %v1173_v19 = vpack.c.bf16 %v1116_v18, %v1116_v18  ;;  %1921 = vmatprep.subr.bf16.mxu1 %v2118_v8  ;;  %v2015_v17 = vld [vmem:[%s2557_s13] sm:$0xff]  }
 0x561   : > { %v1876_v20 = vpop.f32.mrf.mxu1  ;;  %v1881_v21 = vpop.f32.mrf.mxu0  ;;  %v1765_v18 = vld [vmem:[%s2556_s12] ss:$0 sm:$0xff] }
 0x562   : > { %1904 = vmatmul.mubr.msk.bf16.vlgmr.msra.gmra.mxu0 %vm741_vm2, %v1173_v19 }
 0x563   : > { %v1119_v22 = vpop.f32.mrf.mxu0  ;;  %v1165_v23 = vpop.f32.mrf.mxu1  ;;  %1917 = vmatprep.mubr.msk.bf16.mxu0 %vm2119_vm1, %v2118_v8  ;;  %1914 = vmatpush3.bf16.msra.mxu0 %v2006_v61 }
 0x564   : > { %v1174_v24 = vpack.c.bf16 %v1165_v23, %v1165_v23  ;;  %1915 = vmatprep.subr.bf16.mxu0 %v2118_v8 }
 0x565   : > { %v1882_v25 = vpop.f32.mrf.mxu0  ;;  %v1887_v26 = vpop.f32.mrf.mxu1 }
 0x566   : > { %1910 = vmatmul.mubr.msk.bf16.vlgmr.msra.gmra.mxu1 %vm741_vm2, %v1174_v24 }
 0x567   : > { %v1168_v27 = vpop.f32.mrf.mxu1  ;;  %1937 = vmatprep.mubr.msk.bf16.mxu1 %vm2119_vm1, %v2118_v8  ;;  %1922 = vmatpush3.bf16.msra.mxu1 %v2008_v10 }
 0x568   : > { %1923 = vmatprep.subr.bf16.mxu1 %v2118_v8 }
 0x569   : > { %v1888_v28 = vpop.f32.mrf.mxu1 }
 0x56b   : > { %1924 = vmatpush3.bf16.msra.mxu1 %v2009_v11 }
 0x56c   : > { %1925 = vmatprep.subr.bf16.mxu1 %v2118_v8 }
 0x56f   : > { %1926 = vmatpush3.bf16.msra.mxu1 %v2010_v12 }
 0x570   : > { %1927 = vmatprep.subr.bf16.mxu1 %v2118_v8 }
 0x573   : > { %1928 = vmatpush3.bf16.msra.mxu1 %v2011_v13 }
 0x574   : > { %1929 = vmatprep.subr.bf16.mxu1 %v2118_v8 }
 0x577   : > { %1930 = vmatpush3.bf16.msra.mxu1 %v2012_v14 }
 0x578   : > { %1931 = vmatprep.subr.bf16.mxu1 %v2118_v8 }
 0x57b   : > { %1932 = vmatpush3.bf16.msra.mxu1 %v2013_v15 }
 0x57c   : > { %1933 = vmatprep.subr.bf16.mxu1 %v2118_v8 }
 0x57f   : > { %1934 = vmatpush3.bf16.msra.mxu1 %v2014_v16 }
 0x580   : > { %1935 = vmatprep.subr.bf16.mxu1 %v2118_v8 }
 0x583   : > { %1936 = vmatpush3.bf16.msra.mxu1 %v2015_v17 }
 0x5ab   : > { %v1219_v29 = vpop.f32.mrf.mxu0 }
 0x5ac   : > { %v1363_v38 = vsel %vm554_vm0, %v1219_v29, 0.0 }
 0x5ad   : > { %v1893_v30 = vpop.f32.mrf.mxu0 }
 0x5af   : > { %v1222_v31 = vpop.f32.mrf.mxu0 }
 0x5b1   : > { %v1894_v32 = vpop.f32.mrf.mxu0 }
 0x61e   : > { %v1265_v33 = vpop.f32.mrf.mxu1 }
 0x61f   : > { %v1364_v35 = vsel %vm554_vm0, %v1265_v33, 0.0 }
 0x620   : > { %v1899_v34 = vpop.f32.mrf.mxu1  ;;  %v1365_v40 = vadd.f32 %v1364_v35, %v1363_v38 }
 0x622   : > { %v1268_v36 = vpop.f32.mrf.mxu1  ;;  %v1311_v37 = vpop.f32.mrf.mxu0 }
 0x623   : > { %v1366_v39 = vsel %vm554_vm0, %v1311_v37, 0.0 }
 0x624   : > { %v1900_v41 = vpop.f32.mrf.mxu1  ;;  %v1905_v42 = vpop.f32.mrf.mxu0  ;;  %v1367_v43 = vadd.f32 %v1366_v39, %v1365_v40 }
 0x626   : > { %v1314_v44 = vpop.f32.mrf.mxu0  ;;  %v1357_v45 = vpop.f32.mrf.mxu1 }
 0x627   : > { %v1368_v46 = vsel %vm554_vm0, %v1357_v45, 0.0 }
 0x628   : > { %v1369_v48 = vadd.f32 %v1368_v46, %v1367_v43  ;;  %v1906_v49 = vpop.f32.mrf.mxu0  ;;  %v1911_v50 = vpop.f32.mrf.mxu1 }
 0x62a   : > { %v1377_v51 = vadd.f32 %v1762_v47, %v1369_v48  ;;  %v1360_v52 = vpop.f32.mrf.mxu1 }
 0x62c   : > { %v1912_v53 = vpop.f32.mrf.mxu1  ;;  %v2438_v54 = vadd.f32 %v1377_v51, %v2275_v0  ;;  %v2007_v0 = vld [vmem:[%s2555_s11] sm:$0xff]  }
 0x62d   : > { %1916 = vmatpush3.bf16.msra.mxu0 %v2007_v0 }
 0x62e   : > { %v1381_v55 = vsel %vm554_vm0, %v2438_v54, 0.0 }
 0x62f   : > { %1382 = vadd.xlane.f32.xlu1 %v1381_v55 }
 0x6b8   : > { %v1383_v56 = vpop.xlane.xlu1 %1382 }
 0x6b9   : > { %v1384_v57 = vmul.f32 0.03125, %v1383_v56 }
 0x6bb   : > { %v1385_v58 = vsub.f32 %v2438_v54, %v1384_v57 }
 0x6bd   : > { %v1386_v59 = vmul.f32 %v1385_v58, %v1385_v58 }
 0x6bf   : > { %v1387_v60 = vsel %vm554_vm0, %v1386_v59, 0.0 }
 0x6c0   : > { %1388 = vadd.xlane.f32.xlu0 %v1387_v60 }
 0x749   : > { %v1389_v62 = vpop.xlane.xlu0 %1388 }
 0x74a   : > { %v1390_v63 = vmul.f32 0.03125, %v1389_v62 }
 0x74c   : > { %v1391_v1 = vadd.f32 1e-05, %v1390_v63 }
 0x74e   : > { %2034 = vrsqrt.f32 %v1391_v1 }
 0x75b   : > { %v2035_v2 = vpop.eup %2034 }
 0x75c   : > { %v1393_v4 = vmul.f32 %v2035_v2, %v1385_v58 }
 0x75e   : > { %v1400_v6 = vmul.f32 %v1763_v3, %v1393_v4 }
 0x760   : > { %v1407_v7 = vadd.f32 %v1764_v5, %v1400_v6 }
 0x762   : > { %v1408_v9 = vpack.c.bf16 %v1407_v7, %v1407_v7 }
 0x764   : > { %1918 = vmatmul.mubr.msk.bf16.vlgmr.msra.gmra.mxu0 %vm554_vm0, %v1408_v9 }
 0x824   : > { %v1469_v19 = vpop.f32.mrf.mxu0 }
 0x825   : > { %v1470_v20 = vadd.f32 %v1765_v18, %v1469_v19 }
 0x826   : > { %v1919_v21 = vpop.f32.mrf.mxu0 }
 0x827   : > { %v1769_v22 = vmul.f32 -1.702, %v1470_v20 }
 0x828   : > { %v1472_v23 = vpop.f32.mrf.mxu0 }
 0x829   : > { %v1477_v24 = vmul.f32 1.442695, %v1769_v22 }
 0x82a   : > { %v1920_v25 = vpop.f32.mrf.mxu0 }
 0x82b   : > { %2036 = vpow2.f32 %v1477_v24 }
 0x838   : > { %v2037_v8 = vpop.eup %2036 }
 0x839   : > { %v1479_v26 = vadd.f32 1.0, %v2037_v8 }
 0x83b   : > { %2038 = vrcp.f32 %v1479_v26 }
 0x848   : > { %v2039_v27 = vpop.eup %2038 }
 0x849   : > { %v1482_v28 = vmul.f32 %v2039_v27, %v1470_v20 }
 0x84b   : > { %v1483_v29 = vpack.c.bf16 %v1482_v28, %v1482_v28 }
 0x84d   : > { %1938 = vmatmul.mubr.bf16.vlgmr.msra.gmra.mxu1 %v1483_v29 }
 0x84e   : > { %2053 = shalt.err (!%p2050_p5)
}
 0x84f   : > { %s2054_s24 = scalar_lea.hbm %s1631_s3, 128  ;;  %s2058_s17 = scalar_lea.hbm %s2560_s16, 256 }
 0x850   : > { %p2055_p6 = scmp.ne.s32.totalorder %s1631_s3, %s2054_s24  ;;  %p2059_p10 = scmp.lt.s32.totalorder %s1631_s3, %s2560_s16 }
 0x851   : > { %p2060_p11 = scmp.lt.s32.totalorder %s2058_s17, %s2054_s24 }
 0x852   : > { %p2056_p7 = pnand %p2055_p6, %p2250_p4 }
 0x853   : > { %p2061_p12 = por %p2060_p11, %p2059_p10 }
 0x854   : > { %p2057_p9 = pneg %p2056_p7 }
 0x856   : > { %p2062_p13 = pnand %p2061_p12, %p2057_p9 }
 0x858   : > { %2065 = shalt.err (!%p2062_p13)
}
 0x859   : > { %1941 = dma.vmem_to_hbm [thread:$0]  (%p2250_p4), %s1634_s29, 128, %s1631_s3, %s1616_s25   ;;  %v1770_v30 = vld [vmem:[%s2558_s14] ss:$0 sm:$0xff] }
 0x85a   : > { %s2587_s5 = sshll.u32 %s2267_s20, 3 }
 0x85b   : > { %s549_s30 = scalar_lea.vmem %s2559_s15, %s2587_s5 }
 0x90d   : > { %v1589_v31 = vpop.f32.mrf.mxu1 }
 0x90e   : > { %v1590_v32 = vadd.f32 %v1770_v30, %v1589_v31 }
 0x90f   : > { %v1939_v33 = vpop.f32.mrf.mxu1 }
 0x910   : > { %v1595_v34 = vadd.f32 %v1590_v32, %v2438_v54 }
 0x911   : > { %v1592_v35 = vpop.f32.mrf.mxu1 }
 0x912   : > { %1596 = vst.msk [vmem:[%s549_s30] sm:$0xff] %vm554_vm0, %v1595_v34 }
 0x913   : > { %v1940_v36 = vpop.f32.mrf.mxu1 }
 0x914 PF: > { %p1947_p4 = scmp.ge.s32.totalorder %s2116_s26, 2  ;;  %s1655_s0 = sand.u32 1, %s2096_s21  }
 0x915   : > { %s1656_s20 = scalar_lea.sflag [#allocation3], %s1655_s0 }
 0x916   : > { %p1944_p0 = pnand %p1947_p4, %p2257_p8 }
 0x918   : > { %p1945_p1 = pneg %p1944_p0 }
 0x91a   : > { %2091 = dma.done.wait (%p1945_p1), %s1656_s20, 128  }
 0x91b   : > { %2093 = vsyncadd (%p1945_p1), %s1656_s20, 4294967168  ;;  %s30_s26 = sadd.s32 1, %s2116_s26   ;;  %s2588_s29 = sld [smem:[#allocation7_spill]] }
 0x91c   : > { %p27_p2 = scmp.ge.s32.totalorder %s30_s26, 4   ;;  %s2589_s24 = sld [smem:[#allocation5_spill]] }
 0x91d   : > { %s2590_s25 = sld [smem:[#allocation6_spill]]  ;;  %s2591_s21 = smov %s2100_s22 }
 0x91e   : > { %s2592_s22 = smov %s2104_s23  ;;  %29 = sbr.rel (!%p27_p2) target bundleno = 12 (0xc), region = 127 }
 0x921   : > { %s2593_s23 = smov %s2588_s29 }
 0x923   :  { %1661 = vsyncpa [#allocation3], 1 }
 0x924   :  { %1663 = vsyncpa [#allocation3 + $0x1], 1 }

</bundles_post_ra>
